<compile_context>
chip_gen: v5e
topology: v5e:2x2
jax: 0.10.0
libtpu: 0.0.40
codegen_flags: <defaults>
</compile_context>

<pallas_src>
import functools

import jax
import jax.numpy as jnp
import numpy as np
from jax import lax
from jax.experimental import pallas as pl
from jax.experimental.pallas import tpu as pltpu

_TAPS = tuple((ry, rx) for ry in (-1, 0, 1) for rx in (-1, 0, 1))


def ibasic_block_kernel(
    x_ref,     # (1, C, N)   input slab (also the residual identity)
    pv_ref,    # (C, 8)      per-channel params: cols [s1, b1, b2, alpha, b3, 0, 0, 0]
    m_ref,     # (8, N)      f32 border masks for the 8 non-center taps
    w1_ref,    # (C, 9*C)    conv1 weights, tap-major columns, bn2 scale folded in
    w2_ref,    # (C, 9*C)    conv2 weights, bn3 scale folded in
    o_ref,     # (1, C, N)
    *,
    W: int,
    n_lanes: int,
    mxu_dtype,
):
    x = x_ref[0]                                   # (C, N), residual identity
    pv = pv_ref[...]
    s1, b1 = pv[:, 0:1], pv[:, 1:2]
    b2, alpha, b3 = pv[:, 2:3], pv[:, 3:4], pv[:, 4:5]
    masks = m_ref[...]                             # (8, N)

    def im2col(y):
        # (9*C, N) patch slab: lane rolls (XLU) + one vmul per non-center tap.
        # Masks were built from pix % (H*W) so any lane a roll wrapped across an
        # image or feature-map border is zeroed exactly (zero padding).
        pieces, mi = [], 0
        for ry, rx in _TAPS:
            sh = ry * W + rx
            if sh == 0:
                pieces.append(y)                   # center tap: no mask needed
            else:
                shifted = pltpu.roll(y, (-sh) % n_lanes, axis=1)
                pieces.append(shifted * masks[mi:mi + 1, :])
                mi += 1
        return jnp.concatenate(pieces, axis=0).astype(mxu_dtype)

    # ---- bn1 (inference affine) ----
    y = x * s1 + b1

    # ---- conv1 (single im2col MXU matmul; bn2 scale pre-folded) + bn2 shift + PReLU ----
    h1 = jnp.dot(w1_ref[...], im2col(y), preferred_element_type=jnp.float32)
    h1 = h1 + b2
    h1 = jnp.where(h1 >= 0, h1, alpha * h1)

    # ---- conv2 (bn3 scale pre-folded) + bn3 shift + residual add ----
    h2 = jnp.dot(w2_ref[...], im2col(h1), preferred_element_type=jnp.float32)
    o_ref[0] = (h2 + b3 + x).astype(o_ref.dtype)


def ibasic_block(x_nchw, params, *, mxu_bf16=False):
    """params: s1,b1,s2,b2,s3,b3 (folded BN scale/shift), alpha, w1/w2 in HWIO."""
    x = x_nchw.astype(jnp.float32)
    B, C, H, W = x.shape
    HW = H * W
    Cout = params["w1"].shape[-1]
    assert Cout == C, "identity IBasicBlock requires inplanes == planes"

    # 2 parallel grid steps when the batch splits evenly (one per v7x TensorCore);
    # the rest of the batch is packed into the lane axis: N = imgs * HW lanes/step.
    G = 2 if B % 2 == 0 else 1
    imgs = B // G
    N = imgs * HW

    # (B,C,H,W) -> (G, C, imgs*HW): wrapper-side layout plumbing so every kernel
    # tile / store is a big lane-dense slab (lane index = img*HW + pixel).
    x_g = x.reshape(G, imgs, C, HW).transpose(0, 2, 1, 3).reshape(G, C, N)

    # Five per-channel vectors consolidated into one (C, 8) slab (single DMA).
    zeros = jnp.zeros((C,), jnp.float32)
    pvec = jnp.stack(
        [params["s1"], params["b1"], params["b2"], params["alpha"], params["b3"],
         zeros, zeros, zeros],
        axis=1,
    ).astype(jnp.float32)

    # Grid-invariant border masks (hoisted out of the kernel). Single-condition
    # masks for taps on a row/column axis, both conditions only for corners.
    pix = np.arange(N, dtype=np.int64) % HW
    hh, ww = pix // W, pix % W
    rows = []
    for ry, rx in _TAPS:
        if ry == 0 and rx == 0:
            continue
        ok = np.ones((N,), dtype=bool)
        if ry != 0:
            ok &= (hh + ry >= 0) & (hh + ry < H)
        if rx != 0:
            ok &= (ww + rx >= 0) & (ww + rx < W)
        rows.append(ok)
    mask = jnp.asarray(np.stack(rows, axis=0).astype(np.float32))      # (8, N)

    # Tap-major weight matrices (Cout, 9*Cin); bn2/bn3 scales constant-folded in.
    mxu_dtype = jnp.bfloat16 if mxu_bf16 else jnp.float32
    w1f = (jnp.transpose(params["w1"], (3, 0, 1, 2)).reshape(Cout, 9 * C)
           * params["s2"][:, None]).astype(mxu_dtype)
    w2f = (jnp.transpose(params["w2"], (3, 0, 1, 2)).reshape(Cout, 9 * Cout)
           * params["s3"][:, None]).astype(mxu_dtype)

    const2d = lambda shape: pl.BlockSpec(shape, lambda g: (0, 0))

    out = pl.pallas_call(
        functools.partial(ibasic_block_kernel, W=W, n_lanes=N, mxu_dtype=mxu_dtype),
        out_shape=jax.ShapeDtypeStruct((G, Cout, N), jnp.float32),
        grid_spec=pltpu.PrefetchScalarGridSpec(
            num_scalar_prefetch=0,
            grid=(G,),
            in_specs=[
                pl.BlockSpec((1, C, N), lambda g: (g, 0, 0)),   # x slab
                const2d((C, 8)),                                # packed per-channel params
                const2d((8, N)),                                # border masks
                const2d((Cout, 9 * C)),                         # w1 (bn2 folded)
                const2d((Cout, 9 * Cout)),                      # w2 (bn3 folded)
            ],
            out_specs=pl.BlockSpec((1, Cout, N), lambda g: (g, 0, 0)),
        ),
        compiler_params=pltpu.CompilerParams(
            dimension_semantics=("parallel",)),                 # megacore-shardable
    )(x_g, pvec, mask, w1f, w2f)

    return out.reshape(G, Cout, imgs, HW).transpose(0, 2, 1, 3).reshape(B, Cout, H, W)


# ---------------- pure-JAX reference (for a correctness check) ----------------
def ref_forward(x_nchw, params):
    x = jnp.transpose(x_nchw, (0, 2, 3, 1)).astype(jnp.float32)  # NHWC
    Cin = x.shape[-1]
    Cout = params["w1"].shape[-1]
    y = x * params["s1"].reshape(1, 1, 1, Cin) + params["b1"].reshape(1, 1, 1, Cin)
    y = lax.conv_general_dilated(
        y, params["w1"], window_strides=(1, 1), padding="SAME",
        dimension_numbers=("NHWC", "HWIO", "NHWC"))
    y = y * params["s2"].reshape(1, 1, 1, Cout) + params["b2"].reshape(1, 1, 1, Cout)
    a = params["alpha"].reshape(1, 1, 1, Cout)
    y = jnp.where(y >= 0, y, a * y)
    y = lax.conv_general_dilated(
        y, params["w2"], window_strides=(1, 1), padding="SAME",
        dimension_numbers=("NHWC", "HWIO", "NHWC"))
    y = y * params["s3"].reshape(1, 1, 1, Cout) + params["b3"].reshape(1, 1, 1, Cout)
    y = y + x
    return jnp.transpose(y, (0, 3, 1, 2))


def make_params(key, cin, cout, eps=1e-5):
    ks = jax.random.split(key, 12)

    def bn(kg, kb, km, kv, c):
        gamma = 0.5 + jax.random.uniform(kg, (c,), jnp.float32)
        beta = 0.1 * jax.random.normal(kb, (c,), jnp.float32)
        mean = 0.1 * jax.random.normal(km, (c,), jnp.float32)
        var = 0.5 + jax.random.uniform(kv, (c,), jnp.float32)
        scale = gamma * lax.rsqrt(var + eps)
        shift = beta - mean * scale
        return scale, shift

    s1, b1 = bn(ks[0], ks[1], ks[2], ks[3], cin)
    s2, b2 = bn(ks[4], ks[5], ks[6], ks[7], cout)
    s3, b3 = bn(ks[8], ks[9], ks[10], ks[11], cout)
    kw1, kw2, ka = jax.random.split(jax.random.fold_in(key, 7), 3)
    w1 = 0.1 * jax.random.normal(kw1, (3, 3, cin, cout), jnp.float32)   # HWIO
    w2 = 0.1 * jax.random.normal(kw2, (3, 3, cout, cout), jnp.float32)  # HWIO
    alpha = 0.25 + 0.05 * jax.random.normal(ka, (cout,), jnp.float32)   # PReLU slopes
    return dict(s1=s1, b1=b1, w1=w1, s2=s2, b2=b2, alpha=alpha,
                w2=w2, s3=s3, b3=b3)


if __name__ == "__main__":
    key = jax.random.PRNGKey(0)
    # inplanes == planes == 8, stride=1, no downsample; B=4 exercises the
    # batch-in-lanes packing (2 grid steps x 2 images packed per step).
    B, C, H, W = 4, 8, 16, 16
    kx, kp = jax.random.split(key)
    x = jax.random.normal(kx, (B, C, H, W), jnp.float32)   # NCHW, like PyTorch
    params = make_params(kp, C, C)

    out = jax.block_until_ready(ibasic_block(x, params))
    ref = jax.block_until_ready(ref_forward(x, params))
    np.testing.assert_allclose(np.asarray(out), np.asarray(ref), rtol=1e-4, atol=1e-4)
    assert out.shape == (B, C, H, W)

    print("KERNEL_OK")
</pallas_src>

<mosaic_0001>
module attributes {stable_mosaic.version = 11 : i64} {
  func.func @ibasic_block_kernel(%arg0: i32, %arg1: memref<1x8x512xf32, #tpu.memory_space<vmem>>, %arg2: memref<8x8xf32, #tpu.memory_space<vmem>>, %arg3: memref<8x512xf32, #tpu.memory_space<vmem>>, %arg4: memref<8x72xf32, #tpu.memory_space<vmem>>, %arg5: memref<8x72xf32, #tpu.memory_space<vmem>>, %arg6: memref<1x8x512xf32, #tpu.memory_space<vmem>>) attributes {dimension_semantics = [#tpu.dimension_semantics<parallel>], iteration_bounds = array<i64: 2>, scalar_prefetch = 0 : i64, scratch_operands = 0 : i64, tpu.core_type = #tpu.core_type<tc>, window_params = [{transform_indices = @transform_0, window_bounds = array<i64: 1, 8, 512>}, {pipeline_mode = #tpu.pipeline_mode<synchronous>, transform_indices = @transform_1, window_bounds = array<i64: 8, 8>}, {pipeline_mode = #tpu.pipeline_mode<synchronous>, transform_indices = @transform_2, window_bounds = array<i64: 8, 512>}, {pipeline_mode = #tpu.pipeline_mode<synchronous>, transform_indices = @transform_3, window_bounds = array<i64: 8, 72>}, {pipeline_mode = #tpu.pipeline_mode<synchronous>, transform_indices = @transform_4, window_bounds = array<i64: 8, 72>}, {transform_indices = @transform_5, window_bounds = array<i64: 1, 8, 512>}]} {
    %c0 = arith.constant 0 : index
    %c0_0 = arith.constant 0 : index
    %c0_1 = arith.constant 0 : index
    %0 = vector.load %arg1[%c0, %c0_0, %c0_1] : memref<1x8x512xf32, #tpu.memory_space<vmem>>, vector<1x8x512xf32>
    %1 = vector.shape_cast %0 : vector<1x8x512xf32> to vector<8x512xf32>
    %c0_2 = arith.constant 0 : index
    %c0_3 = arith.constant 0 : index
    %2 = vector.load %arg2[%c0_2, %c0_3] : memref<8x8xf32, #tpu.memory_space<vmem>>, vector<8x8xf32>
    %3 = vector.extract_strided_slice %2 {offsets = [0, 0], sizes = [8, 1], strides = [1, 1]} : vector<8x8xf32> to vector<8x1xf32>
    %4 = vector.extract_strided_slice %2 {offsets = [0, 1], sizes = [8, 1], strides = [1, 1]} : vector<8x8xf32> to vector<8x1xf32>
    %5 = vector.extract_strided_slice %2 {offsets = [0, 2], sizes = [8, 1], strides = [1, 1]} : vector<8x8xf32> to vector<8x1xf32>
    %6 = vector.extract_strided_slice %2 {offsets = [0, 3], sizes = [8, 1], strides = [1, 1]} : vector<8x8xf32> to vector<8x1xf32>
    %7 = vector.extract_strided_slice %2 {offsets = [0, 4], sizes = [8, 1], strides = [1, 1]} : vector<8x8xf32> to vector<8x1xf32>
    %c0_4 = arith.constant 0 : index
    %c0_5 = arith.constant 0 : index
    %8 = vector.load %arg3[%c0_4, %c0_5] : memref<8x512xf32, #tpu.memory_space<vmem>>, vector<8x512xf32>
    %9 = vector.broadcast %3 : vector<8x1xf32> to vector<8x512xf32>
    %10 = arith.mulf %1, %9 : vector<8x512xf32>
    %11 = vector.broadcast %4 : vector<8x1xf32> to vector<8x512xf32>
    %12 = arith.addf %10, %11 : vector<8x512xf32>
    %c0_6 = arith.constant 0 : index
    %c0_7 = arith.constant 0 : index
    %13 = vector.load %arg4[%c0_6, %c0_7] : memref<8x72xf32, #tpu.memory_space<vmem>>, vector<8x72xf32>
    %c17_i32 = arith.constant 17 : i32
    %14 = tpu.dynamic_rotate %12 by %c17_i32 dim 1 : vector<8x512xf32>, i32 -> vector<8x512xf32>
    %15 = vector.extract_strided_slice %8 {offsets = [0, 0], sizes = [1, 512], strides = [1, 1]} : vector<8x512xf32> to vector<1x512xf32>
    %16 = vector.broadcast %15 : vector<1x512xf32> to vector<8x512xf32>
    %17 = arith.mulf %14, %16 : vector<8x512xf32>
    %c16_i32 = arith.constant 16 : i32
    %18 = tpu.dynamic_rotate %12 by %c16_i32 dim 1 : vector<8x512xf32>, i32 -> vector<8x512xf32>
    %19 = vector.extract_strided_slice %8 {offsets = [1, 0], sizes = [1, 512], strides = [1, 1]} : vector<8x512xf32> to vector<1x512xf32>
    %20 = vector.broadcast %19 : vector<1x512xf32> to vector<8x512xf32>
    %21 = arith.mulf %18, %20 : vector<8x512xf32>
    %c15_i32 = arith.constant 15 : i32
    %22 = tpu.dynamic_rotate %12 by %c15_i32 dim 1 : vector<8x512xf32>, i32 -> vector<8x512xf32>
    %23 = vector.extract_strided_slice %8 {offsets = [2, 0], sizes = [1, 512], strides = [1, 1]} : vector<8x512xf32> to vector<1x512xf32>
    %24 = vector.broadcast %23 : vector<1x512xf32> to vector<8x512xf32>
    %25 = arith.mulf %22, %24 : vector<8x512xf32>
    %c1_i32 = arith.constant 1 : i32
    %26 = tpu.dynamic_rotate %12 by %c1_i32 dim 1 : vector<8x512xf32>, i32 -> vector<8x512xf32>
    %27 = vector.extract_strided_slice %8 {offsets = [3, 0], sizes = [1, 512], strides = [1, 1]} : vector<8x512xf32> to vector<1x512xf32>
    %28 = vector.broadcast %27 : vector<1x512xf32> to vector<8x512xf32>
    %29 = arith.mulf %26, %28 : vector<8x512xf32>
    %c511_i32 = arith.constant 511 : i32
    %30 = tpu.dynamic_rotate %12 by %c511_i32 dim 1 : vector<8x512xf32>, i32 -> vector<8x512xf32>
    %31 = vector.extract_strided_slice %8 {offsets = [4, 0], sizes = [1, 512], strides = [1, 1]} : vector<8x512xf32> to vector<1x512xf32>
    %32 = vector.broadcast %31 : vector<1x512xf32> to vector<8x512xf32>
    %33 = arith.mulf %30, %32 : vector<8x512xf32>
    %c497_i32 = arith.constant 497 : i32
    %34 = tpu.dynamic_rotate %12 by %c497_i32 dim 1 : vector<8x512xf32>, i32 -> vector<8x512xf32>
    %35 = vector.extract_strided_slice %8 {offsets = [5, 0], sizes = [1, 512], strides = [1, 1]} : vector<8x512xf32> to vector<1x512xf32>
    %36 = vector.broadcast %35 : vector<1x512xf32> to vector<8x512xf32>
    %37 = arith.mulf %34, %36 : vector<8x512xf32>
    %c496_i32 = arith.constant 496 : i32
    %38 = tpu.dynamic_rotate %12 by %c496_i32 dim 1 : vector<8x512xf32>, i32 -> vector<8x512xf32>
    %39 = vector.extract_strided_slice %8 {offsets = [6, 0], sizes = [1, 512], strides = [1, 1]} : vector<8x512xf32> to vector<1x512xf32>
    %40 = vector.broadcast %39 : vector<1x512xf32> to vector<8x512xf32>
    %41 = arith.mulf %38, %40 : vector<8x512xf32>
    %c495_i32 = arith.constant 495 : i32
    %42 = tpu.dynamic_rotate %12 by %c495_i32 dim 1 : vector<8x512xf32>, i32 -> vector<8x512xf32>
    %43 = vector.extract_strided_slice %8 {offsets = [7, 0], sizes = [1, 512], strides = [1, 1]} : vector<8x512xf32> to vector<1x512xf32>
    %44 = vector.broadcast %43 : vector<1x512xf32> to vector<8x512xf32>
    %45 = arith.mulf %42, %44 : vector<8x512xf32>
    %46 = tpu.concatenate %17, %21, %25, %29, %12, %33, %37, %41, %45 in 0 : vector<8x512xf32>, vector<8x512xf32>, vector<8x512xf32>, vector<8x512xf32>, vector<8x512xf32>, vector<8x512xf32>, vector<8x512xf32>, vector<8x512xf32>, vector<8x512xf32> -> vector<72x512xf32>
    %cst = arith.constant dense<0.000000e+00> : vector<8x512xf32>
    %47 = tpu.matmul %13, %46, %cst {dimension_numbers = #tpu.dot_dimension_numbers<[1], [0], [0], [1], [0, 0, 1, 1], [], []>} : vector<8x72xf32>, vector<72x512xf32>, vector<8x512xf32> -> vector<8x512xf32>
    %48 = vector.broadcast %5 : vector<8x1xf32> to vector<8x512xf32>
    %49 = arith.addf %47, %48 : vector<8x512xf32>
    %cst_8 = arith.constant 0.000000e+00 : f32
    %50 = vector.broadcast %cst_8 : f32 to vector<8x512xf32>
    %51 = arith.cmpf oge, %49, %50 : vector<8x512xf32>
    %52 = vector.broadcast %6 : vector<8x1xf32> to vector<8x512xf32>
    %53 = arith.mulf %52, %49 : vector<8x512xf32>
    %54 = arith.select %51, %49, %53 : vector<8x512xi1>, vector<8x512xf32>
    %c0_9 = arith.constant 0 : index
    %c0_10 = arith.constant 0 : index
    %55 = vector.load %arg5[%c0_9, %c0_10] : memref<8x72xf32, #tpu.memory_space<vmem>>, vector<8x72xf32>
    %c17_i32_11 = arith.constant 17 : i32
    %56 = tpu.dynamic_rotate %54 by %c17_i32_11 dim 1 : vector<8x512xf32>, i32 -> vector<8x512xf32>
    %57 = vector.extract_strided_slice %8 {offsets = [0, 0], sizes = [1, 512], strides = [1, 1]} : vector<8x512xf32> to vector<1x512xf32>
    %58 = vector.broadcast %57 : vector<1x512xf32> to vector<8x512xf32>
    %59 = arith.mulf %56, %58 : vector<8x512xf32>
    %c16_i32_12 = arith.constant 16 : i32
    %60 = tpu.dynamic_rotate %54 by %c16_i32_12 dim 1 : vector<8x512xf32>, i32 -> vector<8x512xf32>
    %61 = vector.extract_strided_slice %8 {offsets = [1, 0], sizes = [1, 512], strides = [1, 1]} : vector<8x512xf32> to vector<1x512xf32>
    %62 = vector.broadcast %61 : vector<1x512xf32> to vector<8x512xf32>
    %63 = arith.mulf %60, %62 : vector<8x512xf32>
    %c15_i32_13 = arith.constant 15 : i32
    %64 = tpu.dynamic_rotate %54 by %c15_i32_13 dim 1 : vector<8x512xf32>, i32 -> vector<8x512xf32>
    %65 = vector.extract_strided_slice %8 {offsets = [2, 0], sizes = [1, 512], strides = [1, 1]} : vector<8x512xf32> to vector<1x512xf32>
    %66 = vector.broadcast %65 : vector<1x512xf32> to vector<8x512xf32>
    %67 = arith.mulf %64, %66 : vector<8x512xf32>
    %c1_i32_14 = arith.constant 1 : i32
    %68 = tpu.dynamic_rotate %54 by %c1_i32_14 dim 1 : vector<8x512xf32>, i32 -> vector<8x512xf32>
    %69 = vector.extract_strided_slice %8 {offsets = [3, 0], sizes = [1, 512], strides = [1, 1]} : vector<8x512xf32> to vector<1x512xf32>
    %70 = vector.broadcast %69 : vector<1x512xf32> to vector<8x512xf32>
    %71 = arith.mulf %68, %70 : vector<8x512xf32>
    %c511_i32_15 = arith.constant 511 : i32
    %72 = tpu.dynamic_rotate %54 by %c511_i32_15 dim 1 : vector<8x512xf32>, i32 -> vector<8x512xf32>
    %73 = vector.extract_strided_slice %8 {offsets = [4, 0], sizes = [1, 512], strides = [1, 1]} : vector<8x512xf32> to vector<1x512xf32>
    %74 = vector.broadcast %73 : vector<1x512xf32> to vector<8x512xf32>
    %75 = arith.mulf %72, %74 : vector<8x512xf32>
    %c497_i32_16 = arith.constant 497 : i32
    %76 = tpu.dynamic_rotate %54 by %c497_i32_16 dim 1 : vector<8x512xf32>, i32 -> vector<8x512xf32>
    %77 = vector.extract_strided_slice %8 {offsets = [5, 0], sizes = [1, 512], strides = [1, 1]} : vector<8x512xf32> to vector<1x512xf32>
    %78 = vector.broadcast %77 : vector<1x512xf32> to vector<8x512xf32>
    %79 = arith.mulf %76, %78 : vector<8x512xf32>
    %c496_i32_17 = arith.constant 496 : i32
    %80 = tpu.dynamic_rotate %54 by %c496_i32_17 dim 1 : vector<8x512xf32>, i32 -> vector<8x512xf32>
    %81 = vector.extract_strided_slice %8 {offsets = [6, 0], sizes = [1, 512], strides = [1, 1]} : vector<8x512xf32> to vector<1x512xf32>
    %82 = vector.broadcast %81 : vector<1x512xf32> to vector<8x512xf32>
    %83 = arith.mulf %80, %82 : vector<8x512xf32>
    %c495_i32_18 = arith.constant 495 : i32
    %84 = tpu.dynamic_rotate %54 by %c495_i32_18 dim 1 : vector<8x512xf32>, i32 -> vector<8x512xf32>
    %85 = vector.extract_strided_slice %8 {offsets = [7, 0], sizes = [1, 512], strides = [1, 1]} : vector<8x512xf32> to vector<1x512xf32>
    %86 = vector.broadcast %85 : vector<1x512xf32> to vector<8x512xf32>
    %87 = arith.mulf %84, %86 : vector<8x512xf32>
    %88 = tpu.concatenate %59, %63, %67, %71, %54, %75, %79, %83, %87 in 0 : vector<8x512xf32>, vector<8x512xf32>, vector<8x512xf32>, vector<8x512xf32>, vector<8x512xf32>, vector<8x512xf32>, vector<8x512xf32>, vector<8x512xf32>, vector<8x512xf32> -> vector<72x512xf32>
    %cst_19 = arith.constant dense<0.000000e+00> : vector<8x512xf32>
    %89 = tpu.matmul %55, %88, %cst_19 {dimension_numbers = #tpu.dot_dimension_numbers<[1], [0], [0], [1], [0, 0, 1, 1], [], []>} : vector<8x72xf32>, vector<72x512xf32>, vector<8x512xf32> -> vector<8x512xf32>
    %90 = vector.broadcast %7 : vector<8x1xf32> to vector<8x512xf32>
    %91 = arith.addf %89, %90 : vector<8x512xf32>
    %92 = arith.addf %91, %1 : vector<8x512xf32>
    %c0_20 = arith.constant 0 : index
    %c0_21 = arith.constant 0 : index
    %c0_22 = arith.constant 0 : index
    %93 = vector.load %arg6[%c0_20, %c0_21, %c0_22] : memref<1x8x512xf32, #tpu.memory_space<vmem>>, vector<1x8x512xf32>
    %94 = vector.shape_cast %93 : vector<1x8x512xf32> to vector<8x512xf32>
    %95 = vector.shape_cast %92 : vector<8x512xf32> to vector<1x8x512xf32>
    tpu.vector_store %arg6[%c0_20, %c0_21, %c0_22], %95 {strides = array<i32>} : memref<1x8x512xf32, #tpu.memory_space<vmem>>, vector<1x8x512xf32>,
    return
  }
  func.func @transform_0(%arg0: i32) -> (i32, i32, i32) {
    %c0_i32 = arith.constant 0 : i32
    %c0_i32_0 = arith.constant 0 : i32
    %c0_i32_1 = arith.constant 0 : i32
    return %arg0, %c0_i32, %c0_i32_0 : i32, i32, i32
  }
  func.func @transform_1(%arg0: i32) -> (i32, i32) {
    %c0_i32 = arith.constant 0 : i32
    %c0_i32_0 = arith.constant 0 : i32
    %c0_i32_1 = arith.constant 0 : i32
    return %c0_i32, %c0_i32_0 : i32, i32
  }
  func.func @transform_2(%arg0: i32) -> (i32, i32) {
    %c0_i32 = arith.constant 0 : i32
    %c0_i32_0 = arith.constant 0 : i32
    %c0_i32_1 = arith.constant 0 : i32
    return %c0_i32, %c0_i32_0 : i32, i32
  }
  func.func @transform_3(%arg0: i32) -> (i32, i32) {
    %c0_i32 = arith.constant 0 : i32
    %c0_i32_0 = arith.constant 0 : i32
    %c0_i32_1 = arith.constant 0 : i32
    return %c0_i32, %c0_i32_0 : i32, i32
  }
  func.func @transform_4(%arg0: i32) -> (i32, i32) {
    %c0_i32 = arith.constant 0 : i32
    %c0_i32_0 = arith.constant 0 : i32
    %c0_i32_1 = arith.constant 0 : i32
    return %c0_i32, %c0_i32_0 : i32, i32
  }
  func.func @transform_5(%arg0: i32) -> (i32, i32, i32) {
    %c0_i32 = arith.constant 0 : i32
    %c0_i32_0 = arith.constant 0 : i32
    %c0_i32_1 = arith.constant 0 : i32
    return %arg0, %c0_i32, %c0_i32_0 : i32, i32, i32
  }
}

</mosaic_0001>

<bundles_post_ra>
// kernel: tpu_custom_call.1
= control target key start
LH: loop header
LB: loop body
LE: loop exit
PB: predicated region body
PF: predicated region fallthrough
CT: control target
= control target key end

     0   :  { %10 = vsyncpa [#allocation3], 0  ;;  %s2080_s0 = inlined_call_operand.hbm [shape: f32[2,8,512], index: 0, kind: input, shape index: {}]   ;;  %s2081_s1 = inlined_call_operand.hbm [shape: f32[8,8], index: 1, kind: input, shape index: {}]   ;;  %s2082_s2 = inlined_call_operand.hbm [shape: f32[8,512], index: 2, kind: input, shape index: {}]   ;;  %s2083_s3 = inlined_call_operand.hbm [shape: f32[8,72], index: 3, kind: input, shape index: {}]   ;;  %s2084_s4 = inlined_call_operand.hbm [shape: f32[8,72], index: 4, kind: input, shape index: {}]   ;;  %s2085_s5 = inlined_call_operand.hbm [shape: f32[2,8,512], index: 5, kind: output, shape index: {}]  }
   0x1   :  { %12 = vsyncpa [#allocation3 + $0x1], 0 }
   0x2   :  { %13 = vsyncpa [#allocation6], 0 }
   0x3   :  { %14 = vsyncpa [#allocation9], 0 }
   0x4   :  { %15 = vsyncpa [#allocation4], 0 }
   0x5   :  { %17 = vsyncpa [#allocation4 + $0x1], 0  ;;  %s1362_s18 = smov 0   ;;  %s1364_s19 = smov 0  }
   0x6   :  { %s1366_s20 = smov 0   ;;  %s1368_s21 = smov 0  }
   0x7 LB: > { %s176_s24 = sshll.u32 %s2081_s1, 4  ;;  %s1386_s25 = sadd.s32 4294967295, %s1313_s21   ;;  %s1313_s21 = sphi %s1368_s21, %s2101_s21   ;;  %s1309_s20 = sphi %s1366_s20, %s2100_s20   ;;  %s1305_s19 = sphi %s1364_s19, %s2099_s19   ;;  %s1301_s18 = sphi %s1362_s18, %s2098_s18   ;;  %s177_s24 = int_to_ptr.hbm [resolvable:$true] %s176_s24 }
   0x8   : > { %p952_p0 = scmp.ge.s32.totalorder %s1313_s21, 1  ;;  %p44_p1 = scmp.eq.s32.totalorder %s1386_s25, 0 }
   0x9   : > { %p164_p2 = scmp.lt.s32.totalorder %s1313_s21, 3  ;;  %s1315_s27 = smov [#allocation5]  }
   0xa   : > { %s178_s28 = sshll.u32 %s1315_s27, 4  ;;  %s200_s6 = sshll.u32 %s2083_s3, 4  ;;  %s179_s28 = int_to_ptr.vmem [resolvable:$true] %s178_s28  ;;  %s201_s6 = int_to_ptr.hbm [resolvable:$true] %s200_s6 }
   0xb   : > { %p1391_p3 = pnand %p952_p0, %p164_p2  ;;  %s1316_s8 = smov [#allocation8]  }
   0xc   : > { %s202_s9 = sshll.u32 %s1316_s8, 4  ;;  %s188_s12 = sshll.u32 %s2082_s2, 4  ;;  %s203_s9 = int_to_ptr.vmem [resolvable:$true] %s202_s9  ;;  %s189_s12 = int_to_ptr.hbm [resolvable:$true] %s188_s12 }
   0xd   : > { %p1003_p5 = pneg %p1391_p3  ;;  %s212_s15 = sshll.u32 %s2084_s4, 4  ;;  %s213_s15 = int_to_ptr.hbm [resolvable:$true] %s212_s15 }
   0xe   : > { %s1317_s16 = smov [#allocation7]   ;;  %s1318_s22 = smov [#allocation10]  }
   0xf   : > { %p1403_p6 = pnand %p1003_p5, %p44_p1  ;;  %s190_s17 = sshll.u32 %s1317_s16, 4  ;;  %s191_s17 = int_to_ptr.vmem [resolvable:$true] %s190_s17 }
  0x10   : > { %s214_s23 = sshll.u32 %s1318_s22, 4  ;;  %s1423_s27 = sadd.s32 1, %s1313_s21   ;;  %s215_s23 = int_to_ptr.vmem [resolvable:$true] %s214_s23 }
  0x11   : > { %1006 = dma.hbm_to_vmem [thread:$0]  (!%p1403_p6), %s177_s24, 128, %s179_s28, [#allocation6]  }
  0x12   : > { %1012 = dma.hbm_to_vmem [thread:$0]  (!%p1403_p6), %s201_s6, 128, %s203_s9, [#allocation9]  }
  0x13   : > { %1009 = dma.hbm_to_vmem [thread:$0]  (!%p1403_p6), %s189_s12, 512, %s191_s17, [#allocation6]  }
  0x14   : > { %1015 = dma.hbm_to_vmem [thread:$0]  (!%p1403_p6), %s213_s15, 128, %s215_s23, [#allocation9]  }
  0x15   : > { %s951_s24 = sadd.s32 4294967294, %s1313_s21   ;;  %s27_s28 = ssub.s32 %s1313_s21, %s1423_s27 }
  0x16   : > { %s30_s29 = sadd.s32 1, %s1309_s20  ;;  %p28_p7 = scmp.eq.s32.totalorder %s27_s28, 0 }
  0x17   : > { %p37_p8 = scmp.ne.s32.totalorder %s1309_s20, %s1305_s19  ;;  %p38_p9 = scmp.eq.s32.totalorder %s1313_s21, 0 }
  0x18   : > { %p43_p10 = scmp.ne.s32.totalorder %s1305_s19, %s1301_s18  ;;  %p151_p13 = scmp.eq.s32.totalorder %s1386_s25, 1 }
  0x19   : > { %s1434_s30 = scalar_select %p28_p7, %s1309_s20, %s30_s29  }
  0x1a   : > { %p1436_p11 = por %p38_p9, %p37_p8  ;;  %p1442_p12 = por %p44_p1, %p43_p10 }
  0x1b   : > { %p157_p0 = scmp.eq.s32.totalorder %s951_s24, 1  ;;  %p1028_p2 = scmp.lt.s32.totalorder %s1313_s21, 2 }
  0x1c   : > { %s225_s8 = sand.u32 1, %s1309_s20   ;;  %p1449_p5 = por %p151_p13, %p37_p8 }
  0x1d   : > { %p1453_p6 = por %p157_p0, %p43_p10  ;;  %s958_s11 = sshll.u32 %s225_s8, 5 }
  0x1e   : > { %s981_s12 = sshll.u32 %s1313_s21, 5  ;;  %s229_s16 = scalar_lea.vmem [#allocation2], %s958_s11 }
  0x1f   : > { %s234_s15 = scalar_lea.hbm %s2080_s0, %s981_s12  ;;  %s238_s17 = sshll.u32 %s229_s16, 4  ;;  %s239_s17 = int_to_ptr.vmem [resolvable:$true] %s238_s17 }
  0x20   : > { %s236_s22 = sshll.u32 %s234_s15, 4  ;;  %p1463_p7 = pnand %p1028_p2, %p1436_p11  ;;  %s237_s22 = int_to_ptr.hbm [resolvable:$true] %s236_s22 }
  0x21   : > { %s226_s24 = scalar_lea.sflag [#allocation3], %s225_s8  ;;  %s1209_s28 = sshra.s32 %s237_s22, 4  ;;  %s1210_s28 = int_to_ptr.hbm [resolvable:$true] %s1209_s28 }
  0x22   : > { %s1211_s29 = scalar_lea.hbm %s1210_s28, 32  ;;  %p1213_p9 = pneg %p1463_p7 }
  0x23   : > { %p1212_p8 = scmp.ne.s32.totalorder %s1210_s28, %s1211_s29  ;;  %s1216_s13 = scalar_lea.hbm %s2080_s0, 64 }
  0x24   : > { %p1217_p11 = scmp.lt.s32.totalorder %s1210_s28, %s2080_s0  ;;  %p1218_p0 = scmp.lt.s32.totalorder %s1216_s13, %s1211_s29 }
  0x25   : > { %p1214_p10 = pnand %p1213_p9, %p1212_p8 }
  0x26   : > { %p1219_p2 = por %p1218_p0, %p1217_p11 }
  0x27   : > { %p1215_p13 = pneg %p1214_p10 }
  0x29   : > { %p1220_p4 = pnand %p1219_p2, %p1215_p13 }
  0x2b   : > { %1223 = shalt.err (!%p1220_p4)
}
  0x2c   : > { %1019 = dma.hbm_to_vmem [thread:$0]  (!%p1463_p7), %s237_s22, 512, %s239_s17, %s226_s24  }
  0x2d   : > { %247 = sbr.rel (%p1391_p3) target bundleno = 859 (0x35b), region = 40  ;;  %s1480_s8 = sand.u32 (!%p1391_p3), 1, %s1305_s19  }
  0x2e   : > { %s962_s15 = sshll.u32 (!%p1391_p3), %s1480_s8, 5  ;;  %s250_s16 = scalar_lea.sflag (!%p1391_p3), [#allocation3], %s1480_s8 }
  0x2f   : > { %s1486_s28 = scalar_lea.vmem (!%p1391_p3), [#allocation2], %s962_s15 }
  0x32   : > { %1284 = dma.done.wait (%p1442_p12), %s250_s16, 512  }
  0x33   : > { %1286 = vsyncadd (%p1442_p12), %s250_s16, 4294966784 }
  0x34   : > { %1288 = dma.done.wait (%p44_p1), [#allocation6], 640  }
  0x35   : > { %1290 = vsyncadd (%p44_p1), [#allocation6], 4294966656 }
  0x36   : > { %1292 = dma.done.wait (%p44_p1), [#allocation9], 256  }
  0x37   : > { %1294 = vsyncadd (%p44_p1), [#allocation9], 4294967040  ;;  %v1319_v0 = vmov 0   ;;  %v1500_v1 = vld [vmem:[#allocation5] sm:$0xff]  ;;  %v1320_v2 = vmov 1   ;;  %v1508_v5 = vld [vmem:[%s1486_s28 + $0x18] sm:$0xff]  ;;  %v336_v19 = vlaneseq }
  0x38   : > { %1083 = vset.pattern.permute.xlu0 %v1319_v0  ;;  %v1505_v4 = vld [vmem:[%s1486_s28] sm:$0xff]  ;;  %s1321_s26 = smov 111   ;;  %s1322_s7 = smov 113   ;;  %v1523_v11 = vld [vmem:[%s1486_s28 + $0x10] sm:$0xff]  ;;  %v1533_v14 = vld [vmem:[%s1486_s28 + $0x8] sm:$0xff]  ;;  %vm502_vm8 = vcmask 588800  }
  0x39   : > { %312 = vperm.xlu0 %1083, %v1500_v1   ;;  %s1323_s17 = smov 127   ;;  %s1324_s22 = smov 112   ;;  %v1594_v21 = vand.u32 127, %v336_v19  ;;  %v1596_v22 = vld [vmem:[#allocation7 + $0x18] sm:$0xff]  ;;  %v1616_v33 = vld [vmem:[#allocation7 + $0x10] sm:$0xff]  ;;  %v1636_v45 = vld [vmem:[#allocation7] sm:$0xff] }
  0x3a   : > { %s1325_s23 = smov 1   ;;  %s1326_s24 = smov 15   ;;  %v493_v23 = vperm.slane %v1596_v22, 7  ;;  %v472_v27 = vperm.slane %v1596_v22, 6  ;;  %v451_v31 = vperm.slane %v1596_v22, 5  ;;  %v430_v35 = vperm.slane %v1596_v22, 4 }
  0x3b   : > { %s1327_s29 = smov 16   ;;  %s1328_s11 = smov 17   ;;  %vm464_vm0 = vcmp.lt.s32.totalorder %v1594_v21, 112  ;;  %vm485_vm1 = vcmp.lt.s32.totalorder %v1594_v21, 111  ;;  %vm443_vm2 = vcmp.lt.s32.totalorder %v1594_v21, 113  ;;  %vm422_vm3 = vcmp.lt.s32.totalorder %v1594_v21, 127 }
  0x3c   : > { %v492_v37 = vperm.slane %v1616_v33, 7  ;;  %v1638_v46 = vld [vmem:[#allocation7 + $0x8] sm:$0xff]  ;;  %v490_v47 = vperm.slane %v1636_v45, 7  ;;  %v471_v49 = vperm.slane %v1616_v33, 6  ;;  %v450_v59 = vperm.slane %v1616_v33, 5  ;;  %s982_s12 = sshll.u32 %s1386_s25, 5 }
  0x3d   : > { %v491_v48 = vperm.slane %v1638_v46, 7  ;;  %vm401_vm4 = vcmp.lt.s32.totalorder %v1594_v21, 1  ;;  %v469_v19 = vperm.slane %v1636_v45, 6  ;;  %vm359_vm5 = vcmp.lt.s32.totalorder %v1594_v21, 16  ;;  %s838_s6 = scalar_lea.hbm %s2085_s5, %s982_s12  ;;  %s300_s16 = scalar_lea.vmem [#allocation11], %s962_s15 }
  0x3e   : > { %vm380_vm6 = vcmp.lt.s32.totalorder %v1594_v21, 15  ;;  %vm338_vm7 = vcmp.lt.s32.totalorder %v1594_v21, 17  ;;  %s840_s28 = sshll.u32 %s300_s16, 4  ;;  %s842_s25 = sshll.u32 %s838_s6, 4  ;;  %s841_s28 = int_to_ptr.vmem [resolvable:$true] %s840_s28  ;;  %s843_s25 = int_to_ptr.hbm [resolvable:$true] %s842_s25 }
  0x41   : > { %1084 = vset.pattern.permute.xlu0 %v1320_v2  ;;  %v429_v2 = vperm.slane %v1616_v33, 4 }
  0x42   : > { %320 = vperm.xlu0 %1084, %v1500_v1  }
  0xab   : > { %v313_v3 = vpop.permute.xlu0 %312 }
  0xac   : > { %v315_v6 = vmul.f32 %v313_v3, %v1505_v4  ;;  %v318_v7 = vmul.f32 %v313_v3, %v1508_v5  ;;  %v317_v12 = vmul.f32 %v313_v3, %v1523_v11  ;;  %v316_v15 = vmul.f32 %v313_v3, %v1533_v14 }
  0xb4   : > { %v321_v8 = vpop.permute.xlu0 %320 }
  0xb5   : > { %v1512_v9 = vadd.f32 %v321_v8, %v315_v6  ;;  %v1514_v10 = vadd.f32 %v321_v8, %v318_v7  ;;  %v1526_v13 = vadd.f32 %v321_v8, %v317_v12  ;;  %v1538_v16 = vadd.f32 %v321_v8, %v316_v15 }
  0xb7   : > { %483 = vrot.lane.b32.xlu2 %v1514_v10, %s1321_s26  ;;  %435 = vrot.lane.b32.xlu0 %v1512_v9, %s1322_s7 }
  0xb8   : > { %477 = vrot.lane.b32.xlu1 %v1512_v9, %s1321_s26 }
  0xbf   : > { %414 = vrot.lane.b32.xlu0 %v1512_v9, %s1323_s17  ;;  %456 = vrot.lane.b32.xlu2 %v1512_v9, %s1324_s22 }
  0xc0   : > { %481 = vrot.lane.b32.xlu1 %v1526_v13, %s1321_s26 }
  0xc7   : > { %479 = vrot.lane.b32.xlu0 %v1538_v16, %s1321_s26  ;;  %462 = vrot.lane.b32.xlu2 %v1514_v10, %s1324_s22 }
  0xc8   : > { %460 = vrot.lane.b32.xlu1 %v1526_v13, %s1324_s22 }
  0xcf   : > { %397 = vrot.lane.b32.xlu0 %v1526_v13, %s1325_s23  ;;  %441 = vrot.lane.b32.xlu2 %v1514_v10, %s1322_s7 }
  0xd0   : > { %439 = vrot.lane.b32.xlu1 %v1526_v13, %s1322_s7 }
  0xd7   : > { %374 = vrot.lane.b32.xlu0 %v1538_v16, %s1326_s24  ;;  %420 = vrot.lane.b32.xlu2 %v1514_v10, %s1323_s17 }
  0xd8   : > { %418 = vrot.lane.b32.xlu1 %v1526_v13, %s1323_s17 }
  0xdf   : > { %416 = vrot.lane.b32.xlu0 %v1538_v16, %s1323_s17  ;;  %395 = vrot.lane.b32.xlu2 %v1538_v16, %s1325_s23 }
  0xe0   : > { %458 = vrot.lane.b32.xlu1 %v1538_v16, %s1324_s22 }
  0xe7   : > { %357 = vrot.lane.b32.xlu0 %v1514_v10, %s1327_s29  ;;  %437 = vrot.lane.b32.xlu2 %v1538_v16, %s1322_s7 }
  0xe8   : > { %399 = vrot.lane.b32.xlu1 %v1514_v10, %s1325_s23 }
  0xef   : > { %334 = vrot.lane.b32.xlu0 %v1514_v10, %s1328_s11  ;;  %378 = vrot.lane.b32.xlu2 %v1514_v10, %s1326_s24 }
  0xf0   : > { %376 = vrot.lane.b32.xlu1 %v1526_v13, %s1326_s24 }
  0xf7   : > { %351 = vrot.lane.b32.xlu0 %v1512_v9, %s1327_s29  ;;  %355 = vrot.lane.b32.xlu2 %v1526_v13, %s1327_s29 }
  0xf8   : > { %353 = vrot.lane.b32.xlu1 %v1538_v16, %s1327_s29 }
  0xff   : > { %332 = vrot.lane.b32.xlu2 %v1526_v13, %s1328_s11 }
 0x100   : > { %330 = vrot.lane.b32.xlu1 %v1538_v16, %s1328_s11 }
 0x107   : > { %372 = vrot.lane.b32.xlu2 %v1512_v9, %s1326_s24 }
 0x108   : > { %393 = vrot.lane.b32.xlu1 %v1512_v9, %s1325_s23 }
 0x110   : > { %328 = vrot.lane.b32.xlu1 %v1512_v9, %s1328_s11 }
 0x111   : > { %v484_v17 = vpop.permute.xlu2 %483 }
 0x119   : > { %v1592_v18 = vpop.permute.xlu2 %456 }
 0x121   : > { %v463_v20 = vpop.permute.xlu2 %462 }
 0x122   : > { %v468_v28 = vsel %vm464_vm0, %v463_v20, %v1592_v18 }
 0x123   : > { %v476_v34 = vmul.f32 %v472_v27, %v468_v28  ;;  %v448_v28 = vperm.slane %v1636_v45, 5 }
 0x129   : > { %v1601_v24 = vpop.permute.xlu0 %435  ;;  %v442_v25 = vpop.permute.xlu2 %441 }
 0x12a   : > { %v478_v26 = vpop.permute.xlu1 %477  ;;  %v447_v32 = vsel %vm443_vm2, %v442_v25, %v1601_v24 }
 0x12b   : > { %v489_v29 = vsel %vm485_vm1, %v484_v17, %v478_v26  ;;  %v455_v36 = vmul.f32 %v451_v31, %v447_v32 }
 0x12c   : > { %v497_v30 = vmul.f32 %v493_v23, %v489_v29  ;;  %v449_v29 = vperm.slane %v1638_v46, 5 }
 0x12e   : > { %573 = vmatpush.msra.mxu3 %v497_v30 }
 0x130   : > { %574 = vmatpush.msra.mxu3 %v476_v34 }
 0x131   : > { %v1625_v38 = vpop.permute.xlu0 %414  ;;  %v421_v39 = vpop.permute.xlu2 %420 }
 0x132   : > { %v426_v40 = vsel %vm422_vm3, %v421_v39, %v1625_v38  ;;  %575 = vmatpush.msra.mxu3 %v455_v36  ;;  %v482_v41 = vpop.permute.xlu1 %481 }
 0x133   : > { %v486_v42 = vsel %vm485_vm1, %v482_v41, %v484_v17  ;;  %v434_v43 = vmul.f32 %v430_v35, %v426_v40  ;;  %v427_v40 = vperm.slane %v1636_v45, 4 }
 0x134   : > { %v496_v44 = vmul.f32 %v492_v37, %v486_v42 }
 0x135   : > { %576 = vmatpush.msra.mxu3 %v434_v43 }
 0x136   : > { %553 = vmatpush.msra.mxu2 %v496_v44 }
 0x137   : > { %577 = vmatpush.msra.mxu3 %v1514_v10  ;;  %v408_v10 = vperm.slane %v1616_v33, 3 }
 0x139   : > { %v480_v50 = vpop.permute.xlu0 %479  ;;  %v1654_v57 = vpop.permute.xlu2 %395 }
 0x13a   : > { %v461_v51 = vpop.permute.xlu1 %460  ;;  %v488_v52 = vsel %vm485_vm1, %v478_v26, %v480_v50  ;;  %v487_v53 = vsel %vm485_vm1, %v480_v50, %v482_v41 }
 0x13b   : > { %v465_v54 = vsel %vm464_vm0, %v461_v51, %v463_v20  ;;  %v494_v55 = vmul.f32 %v490_v47, %v488_v52  ;;  %v495_v56 = vmul.f32 %v491_v48, %v487_v53  ;;  %v470_v20 = vperm.slane %v1638_v46, 6 }
 0x13c   : > { %v475_v58 = vmul.f32 %v471_v49, %v465_v54 }
 0x13d   : > { %513 = vmatpush.msra.mxu0 %v494_v55  ;;  %533 = vmatpush.msra.mxu1 %v495_v56  ;;  %v387_v56 = vperm.slane %v1616_v33, 2 }
 0x13e   : > { %554 = vmatpush.msra.mxu2 %v475_v58  ;;  %v388_v58 = vperm.slane %v1596_v22, 2 }
 0x141   : > { %v398_v60 = vpop.permute.xlu0 %397  ;;  %v438_v0 = vpop.permute.xlu2 %437 }
 0x142   : > { %v440_v61 = vpop.permute.xlu1 %439  ;;  %v403_v12 = vsel %vm401_vm4, %v1654_v57, %v398_v60  ;;  %v446_v30 = vsel %vm443_vm2, %v1601_v24, %v438_v0  ;;  %v428_v24 = vperm.slane %v1638_v46, 4 }
 0x143   : > { %v444_v62 = vsel %vm443_vm2, %v440_v61, %v442_v25  ;;  %v412_v17 = vmul.f32 %v408_v10, %v403_v12 }
 0x144   : > { %v454_v63 = vmul.f32 %v450_v59, %v444_v62 }
 0x146   : > { %555 = vmatpush.msra.mxu2 %v454_v63 }
 0x149   : > { %v1664_v3 = vpop.permute.xlu0 %374  ;;  %v1675_v15 = vpop.permute.xlu2 %378 }
 0x14a   : > { %v419_v6 = vpop.permute.xlu1 %418 }
 0x14b   : > { %v423_v7 = vsel %vm422_vm3, %v419_v6, %v421_v39 }
 0x14c   : > { %v433_v8 = vmul.f32 %v429_v2, %v423_v7 }
 0x14e   : > { %556 = vmatpush.msra.mxu2 %v433_v8  ;;  %v346_v8 = vperm.slane %v1596_v22, 0 }
 0x150   : > { %557 = vmatpush.msra.mxu2 %v1526_v13  ;;  %v445_v13 = vsel %vm443_vm2, %v438_v0, %v440_v61 }
 0x151   : > { %v417_v25 = vpop.permute.xlu0 %416  ;;  %v453_v43 = vmul.f32 %v449_v29, %v445_v13  ;;  %v1329_v13 = vmov 3  }
 0x152   : > { %558 = vmatpush.msra.mxu2 %v412_v17  ;;  %v459_v26 = vpop.permute.xlu1 %458  ;;  %v424_v41 = vsel %vm422_vm3, %v417_v25, %v419_v6  ;;  %v425_v42 = vsel %vm422_vm3, %v1625_v38, %v417_v25  ;;  %v356_v38 = vpop.permute.xlu2 %355  ;;  %1086 = vset.pattern.permute.xlu0 %v1329_v13 }
 0x153   : > { %v466_v32 = vsel %vm464_vm0, %v459_v26, %v461_v51  ;;  %v467_v34 = vsel %vm464_vm0, %v1592_v18, %v459_v26  ;;  %v452_v18 = vmul.f32 %v448_v28, %v446_v30  ;;  %v431_v44 = vmul.f32 %v427_v40, %v425_v42  ;;  %v327_v30 = vld [vmem:[#allocation8] sm:$0xff]  ;;  %591 = vperm.xlu0 %1086, %v1500_v1  }
 0x154   : > { %v473_v36 = vmul.f32 %v469_v19, %v467_v34  ;;  %v474_v39 = vmul.f32 %v470_v20, %v466_v32  ;;  %v432_v50 = vmul.f32 %v428_v24, %v424_v41  ;;  %v409_v51 = vperm.slane %v1596_v22, 3 }
 0x155   : > { %v366_v26 = vperm.slane %v1616_v33, 1  ;;  %v1330_v32 = vmov 2   ;;  %v345_v41 = vperm.slane %v1616_v33, 0 }
 0x156   : > { %514 = vmatpush.msra.mxu0 %v473_v36  ;;  %534 = vmatpush.msra.mxu1 %v474_v39 }
 0x157   : > { %1085 = vset.pattern.permute.xlu2 %v1330_v32 }
 0x158   : > { %515 = vmatpush.msra.mxu0 %v452_v18  ;;  %535 = vmatpush.msra.mxu1 %v453_v43 }
 0x159   : > { %v1714_v52 = vpop.permute.xlu0 %357  ;;  %499 = vperm.xlu2 %1085, %v1500_v1  }
 0x15a   : > { %516 = vmatpush.msra.mxu0 %v431_v44  ;;  %536 = vmatpush.msra.mxu1 %v432_v50  ;;  %v400_v53 = vpop.permute.xlu1 %399  ;;  %v333_v0 = vpop.permute.xlu2 %332  ;;  %v406_v50 = vperm.slane %v1636_v45, 3 }
 0x15b   : > { %v402_v54 = vsel %vm401_vm4, %v398_v60, %v400_v53 }
 0x15c   : > { %517 = vmatpush.msra.mxu0 %v1512_v9  ;;  %537 = vmatpush.msra.mxu1 %v1538_v16  ;;  %v413_v55 = vmul.f32 %v409_v51, %v402_v54  ;;  %v367_v9 = vperm.slane %v1596_v22, 1  ;;  %v360_v16 = vsel %vm359_vm5, %v356_v38, %v1714_v52 }
 0x15e   : > { %578 = vmatpush.msra.mxu3 %v413_v55  ;;  %v371_v17 = vmul.f32 %v367_v9, %v360_v16  ;;  %v386_v16 = vperm.slane %v1638_v46, 2 }
 0x161   : > { %v1727_v61 = vpop.permute.xlu0 %334 }
 0x162   : > { %v377_v60 = vpop.permute.xlu1 %376  ;;  %v339_v12 = vsel %vm338_vm7, %v333_v0, %v1727_v61  ;;  %v373_v44 = vpop.permute.xlu2 %372 }
 0x163   : > { %v381_v62 = vsel %vm380_vm6, %v377_v60, %v1675_v15  ;;  %v382_v63 = vsel %vm380_vm6, %v1664_v3, %v377_v60  ;;  %v350_v25 = vmul.f32 %v346_v8, %v339_v12  ;;  %v385_v60 = vperm.slane %v1636_v45, 2 }
 0x164   : > { %v391_v6 = vmul.f32 %v387_v56, %v382_v63  ;;  %v392_v7 = vmul.f32 %v388_v58, %v381_v62  ;;  %v383_v62 = vsel %vm380_vm6, %v373_v44, %v1664_v3  ;;  %v384_v63 = vsel %vm380_vm6, %v1675_v15, %v373_v44 }
 0x165   : > { %v365_v3 = vperm.slane %v1638_v46, 1 }
 0x166   : > { %559 = vmatpush.msra.mxu2 %v391_v6  ;;  %579 = vmatpush.msra.mxu3 %v392_v7 }
 0x168   : > { %580 = vmatpush.msra.mxu3 %v371_v17  ;;  %v364_v17 = vperm.slane %v1636_v45, 1 }
 0x169   : > { %v352_v54 = vpop.permute.xlu0 %351 }
 0x16a   : > { %581 = vmatpush.msra.mxu3 %v350_v25  ;;  %v354_v34 = vpop.permute.xlu1 %353  ;;  %v363_v15 = vsel %vm359_vm5, %v1714_v52, %v352_v54  ;;  %v390_v25 = vmul.f32 %v386_v16, %v383_v62  ;;  %v2087_v52 = vperm.slane %v1636_v45, 0 }
 0x16b   : > { %v361_v36 = vsel %vm359_vm5, %v354_v34, %v356_v38  ;;  %971 = vmatmul.msk.f32.vlgmr.msra.gmra.mxu3 %vm502_vm8, %v327_v30  ;;  %v407_v38 = vperm.slane %v1638_v46, 3  ;;  %v368_v13 = vmul.f32 %v364_v17, %v363_v15 }
 0x16c   : > { %v370_v39 = vmul.f32 %v366_v26, %v361_v36 }
 0x16e   : > { %560 = vmatpush.msra.mxu2 %v370_v39 }
 0x172   : > { %v331_v42 = vpop.permute.xlu1 %330 }
 0x173   : > { %v340_v18 = vsel %vm338_vm7, %v331_v42, %v333_v0 }
 0x174   : > { %v349_v43 = vmul.f32 %v345_v41, %v340_v18 }
 0x176   : > { %561 = vmatpush.msra.mxu2 %v349_v43 }
 0x177   : > { %970 = vmatmul.msk.f32.vlgmr.msra.gmra.mxu2 %vm502_vm8, %v327_v30 }
 0x17a   : > { %v394_v55 = vpop.permute.xlu1 %393 }
 0x17b   : > { %v404_v0 = vsel %vm401_vm4, %v394_v55, %v1654_v57  ;;  %v405_v6 = vsel %vm401_vm4, %v400_v53, %v394_v55  ;;  %v362_v57 = vsel %vm359_vm5, %v352_v54, %v354_v34  ;;  %v389_v53 = vmul.f32 %v385_v60, %v384_v63 }
 0x17c   : > { %v410_v7 = vmul.f32 %v406_v50, %v405_v6  ;;  %v411_v12 = vmul.f32 %v407_v38, %v404_v0  ;;  %v369_v32 = vmul.f32 %v365_v3, %v362_v57  ;;  %v2086_v34 = vperm.slane %v1638_v46, 0 }
 0x17e   : > { %518 = vmatpush.msra.mxu0 %v410_v7  ;;  %538 = vmatpush.msra.mxu1 %v411_v12 }
 0x180   : > { %519 = vmatpush.msra.mxu0 %v389_v53  ;;  %539 = vmatpush.msra.mxu1 %v390_v25 }
 0x182   : > { %520 = vmatpush.msra.mxu0 %v368_v13  ;;  %540 = vmatpush.msra.mxu1 %v369_v32  ;;  %v329_v36 = vpop.permute.xlu1 %328 }
 0x183   : > { %v341_v39 = vsel %vm338_vm7, %v329_v36, %v331_v42  ;;  %v342_v18 = vsel %vm338_vm7, %v1727_v61, %v329_v36 }
 0x184   : > { %v347_v43 = vmul.f32 %v2087_v52, %v342_v18  ;;  %v348_v44 = vmul.f32 %v2086_v34, %v341_v39 }
 0x186   : > { %521 = vmatpush.msra.mxu0 %v347_v43  ;;  %541 = vmatpush.msra.mxu1 %v348_v44 }
 0x187   : > { %968 = vmatmul.msk.f32.vlgmr.msra.gmra.mxu0 %vm502_vm8, %v327_v30  ;;  %969 = vmatmul.msk.f32.vlgmr.msra.gmra.mxu1 %vm502_vm8, %v327_v30 }
 0x1b3   : > { %v500_v54 = vpop.permute.xlu2 %499 }
 0x1c5   : > { %v592_v0 = vpop.permute.xlu0 %591 }
 0x1ee   : > { %v583_v30 = vpop.f32.mrf.mxu3 }
 0x1ef   : > { %v584_v57 = vadd.f32 %v583_v30, %v500_v54 }
 0x1f1   : > { %v597_v25 = vmul.f32 %v592_v0, %v584_v57  ;;  %vm589_vm11 = vcmp.ge.f32.partialorder %v584_v57, 0.0 }
 0x1f3   : > { %v1834_v32 = vsel %vm589_vm11, %v584_v57, %v597_v25 }
 0x1fa   : > { %v563_v15 = vpop.f32.mrf.mxu2 }
 0x1fb   : > { %v564_v53 = vadd.f32 %v563_v15, %v500_v54 }
 0x1fd   : > { %v596_v13 = vmul.f32 %v592_v0, %v564_v53  ;;  %vm588_vm12 = vcmp.ge.f32.partialorder %v564_v53, 0.0 }
 0x1ff   : > { %v1836_v36 = vsel %vm588_vm12, %v564_v53, %v596_v13 }
 0x204   : > { %v523_v55 = vpop.f32.mrf.mxu0  ;;  %v543_v62 = vpop.f32.mrf.mxu1 }
 0x205   : > { %v524_v42 = vadd.f32 %v523_v55, %v500_v54  ;;  %v544_v63 = vadd.f32 %v543_v62, %v500_v54 }
 0x207   : > { %vm586_vm9 = vcmp.ge.f32.partialorder %v524_v42, 0.0  ;;  %v594_v61 = vmul.f32 %v592_v0, %v524_v42  ;;  %vm587_vm10 = vcmp.ge.f32.partialorder %v544_v63, 0.0  ;;  %v595_v6 = vmul.f32 %v592_v0, %v544_v63 }
 0x209   : > { %v1812_v7 = vsel %vm586_vm9, %v524_v42, %v594_v61  ;;  %v1814_v12 = vsel %vm587_vm10, %v544_v63, %v595_v6 }
 0x20a   : > { %699 = vrot.lane.b32.xlu2 %v1812_v7, %s1324_s22  ;;  %715 = vrot.lane.b32.xlu1 %v1812_v7, %s1321_s26 }
 0x20b   : > { %701 = vrot.lane.b32.xlu0 %v1814_v12, %s1324_s22 }
 0x212   : > { %683 = vrot.lane.b32.xlu2 %v1812_v7, %s1322_s7  ;;  %653 = vrot.lane.b32.xlu1 %v1814_v12, %s1325_s23 }
 0x213   : > { %621 = vrot.lane.b32.xlu0 %v1814_v12, %s1327_s29 }
 0x21a   : > { %667 = vrot.lane.b32.xlu2 %v1812_v7, %s1323_s17  ;;  %685 = vrot.lane.b32.xlu1 %v1814_v12, %s1322_s7 }
 0x21b   : > { %605 = vrot.lane.b32.xlu0 %v1814_v12, %s1328_s11 }
 0x222   : > { %721 = vrot.lane.b32.xlu1 %v1834_v32, %s1321_s26  ;;  %717 = vrot.lane.b32.xlu2 %v1814_v12, %s1321_s26 }
 0x223   : > { %703 = vrot.lane.b32.xlu0 %v1836_v36, %s1324_s22 }
 0x22a   : > { %705 = vrot.lane.b32.xlu1 %v1834_v32, %s1324_s22  ;;  %637 = vrot.lane.b32.xlu2 %v1814_v12, %s1326_s24 }
 0x22b   : > { %687 = vrot.lane.b32.xlu0 %v1836_v36, %s1322_s7 }
 0x232   : > { %689 = vrot.lane.b32.xlu1 %v1834_v32, %s1322_s7  ;;  %669 = vrot.lane.b32.xlu2 %v1814_v12, %s1323_s17  ;;  %s1253_s7 = sshra.s32 %s843_s25, 4  ;;  %s1254_s7 = int_to_ptr.hbm [resolvable:$true] %s1253_s7 }
 0x233   : > { %671 = vrot.lane.b32.xlu0 %v1836_v36, %s1323_s17  ;;  %s1255_s15 = scalar_lea.hbm %s1254_s7, 32  ;;  %p1260_p12 = scmp.lt.s32.totalorder %s1254_s7, %s2085_s5 }
 0x234   : > { %p1256_p1 = scmp.ne.s32.totalorder %s1254_s7, %s1255_s15 }
 0x236   : > { %p1257_p3 = pnand %p1256_p1, %p1449_p5 }
 0x238   : > { %p1258_p4 = pneg %p1257_p3 }
 0x23a   : > { %673 = vrot.lane.b32.xlu1 %v1834_v32, %s1323_s17  ;;  %719 = vrot.lane.b32.xlu2 %v1836_v36, %s1321_s26  ;;  %s827_s26 = scalar_lea.sflag [#allocation4], %s1480_s8 }
 0x23b   : > { %657 = vrot.lane.b32.xlu0 %v1834_v32, %s1325_s23 }
 0x242   : > { %641 = vrot.lane.b32.xlu1 %v1834_v32, %s1326_s24  ;;  %655 = vrot.lane.b32.xlu2 %v1836_v36, %s1325_s23 }
 0x243   : > { %639 = vrot.lane.b32.xlu0 %v1836_v36, %s1326_s24 }
 0x24a   : > { %623 = vrot.lane.b32.xlu1 %v1836_v36, %s1327_s29  ;;  %625 = vrot.lane.b32.xlu2 %v1834_v32, %s1327_s29 }
 0x24b   : > { %651 = vrot.lane.b32.xlu0 %v1812_v7, %s1325_s23  ;;  %s1259_s23 = scalar_lea.hbm %s2085_s5, 64 }
 0x24c   : > { %p1261_p7 = scmp.lt.s32.totalorder %s1259_s23, %s1255_s15 }
 0x24e   : > { %p1262_p8 = por %p1261_p7, %p1260_p12 }
 0x250   : > { %p1263_p9 = pnand %p1262_p8, %p1258_p4 }
 0x252   : > { %607 = vrot.lane.b32.xlu1 %v1836_v36, %s1328_s11  ;;  %609 = vrot.lane.b32.xlu2 %v1834_v32, %s1328_s11 }
 0x253   : > { %603 = vrot.lane.b32.xlu0 %v1812_v7, %s1328_s11 }
 0x25a   : > { %635 = vrot.lane.b32.xlu1 %v1812_v7, %s1326_s24  ;;  %619 = vrot.lane.b32.xlu2 %v1812_v7, %s1327_s29 }
 0x264   : > { %v700_v39 = vpop.permute.xlu2 %699 }
 0x26c   : > { %v684_v18 = vpop.permute.xlu2 %683 }
 0x274   : > { %v1884_v43 = vpop.permute.xlu2 %667 }
 0x27c   : > { %v716_v44 = vpop.permute.xlu1 %715  ;;  %v718_v54 = vpop.permute.xlu2 %717 }
 0x27d   : > { %v702_v55 = vpop.permute.xlu0 %701  ;;  %v725_v62 = vsel %vm485_vm1, %v716_v44, %v718_v54 }
 0x27e   : > { %v709_v42 = vsel %vm464_vm0, %v700_v39, %v702_v55  ;;  %v727_v63 = vmul.f32 %v725_v62, %v490_v47 }
 0x27f   : > { %v711_v0 = vmul.f32 %v709_v42, %v469_v19 }
 0x280   : > { %745 = vmatpush.msrb.mxu0 %v727_v63 }
 0x282   : > { %746 = vmatpush.msrb.mxu0 %v711_v0 }
 0x284   : > { %v1894_v61 = vpop.permute.xlu1 %653  ;;  %v1896_v6 = vpop.permute.xlu2 %637 }
 0x285   : > { %v1898_v30 = vpop.permute.xlu0 %621 }
 0x28c   : > { %v686_v15 = vpop.permute.xlu1 %685  ;;  %v670_v57 = vpop.permute.xlu2 %669 }
 0x28d   : > { %v693_v53 = vsel %vm443_vm2, %v684_v18, %v686_v15  ;;  %v1902_v25 = vpop.permute.xlu0 %605  ;;  %v677_v47 = vsel %vm422_vm3, %v1884_v43, %v670_v57 }
 0x28e   : > { %v695_v19 = vmul.f32 %v693_v53, %v448_v28  ;;  %v679_v13 = vmul.f32 %v677_v47, %v427_v40 }
 0x290   : > { %747 = vmatpush.msrb.mxu0 %v695_v19 }
 0x292   : > { %748 = vmatpush.msrb.mxu0 %v679_v13 }
 0x294   : > { %v722_v62 = vpop.permute.xlu1 %721  ;;  %749 = vmatpush.msrb.mxu0 %v1812_v7  ;;  %v720_v42 = vpop.permute.xlu2 %719 }
 0x295   : > { %v726_v63 = vsel %vm485_vm1, %v722_v62, %v716_v44  ;;  %v704_v0 = vpop.permute.xlu0 %703  ;;  %v723_v34 = vsel %vm485_vm1, %v720_v42, %v722_v62  ;;  %v724_v52 = vsel %vm485_vm1, %v718_v54, %v720_v42 }
 0x296   : > { %v708_v28 = vsel %vm464_vm0, %v702_v55, %v704_v0  ;;  %v728_v40 = vmul.f32 %v724_v52, %v491_v48  ;;  %v729_v7 = vmul.f32 %v723_v34, %v492_v37  ;;  %v730_v53 = vmul.f32 %v726_v63, %v493_v23 }
 0x297   : > { %v712_v44 = vmul.f32 %v708_v28, %v470_v20 }
 0x298   : > { %765 = vmatpush.msrb.mxu1 %v728_v40  ;;  %785 = vmatpush.msrb.mxu2 %v729_v7  ;;  %v1331_v7 = vmov 4  }
 0x299   : > { %805 = vmatpush.msrb.mxu3 %v730_v53  ;;  %1087 = vset.pattern.permute.xlu1 %v1331_v7 }
 0x29a   : > { %766 = vmatpush.msrb.mxu1 %v712_v44  ;;  %732 = vperm.xlu1 %1087, %v1500_v1  }
 0x29b   : > { %1088 = vset.pattern.permute.xlu0 %v1331_v7 }
 0x29c   : > { %v706_v54 = vpop.permute.xlu1 %705  ;;  %v656_v62 = vpop.permute.xlu2 %655 }
 0x29d   : > { %v707_v55 = vsel %vm464_vm0, %v704_v0, %v706_v54  ;;  %v710_v48 = vsel %vm464_vm0, %v706_v54, %v700_v39  ;;  %v688_v52 = vpop.permute.xlu0 %687 }
 0x29e   : > { %v692_v37 = vsel %vm443_vm2, %v686_v15, %v688_v52  ;;  %v713_v23 = vmul.f32 %v707_v55, %v471_v49  ;;  %v714_v34 = vmul.f32 %v710_v48, %v472_v27 }
 0x29f   : > { %v696_v20 = vmul.f32 %v692_v37, %v449_v29 }
 0x2a0   : > { %786 = vmatpush.msrb.mxu2 %v713_v23  ;;  %806 = vmatpush.msrb.mxu3 %v714_v34 }
 0x2a1   : > { %767 = vmatpush.msrb.mxu1 %v696_v20 }
 0x2a4   : > { %v690_v47 = vpop.permute.xlu1 %689  ;;  %v626_v28 = vpop.permute.xlu2 %625 }
 0x2a5   : > { %v691_v39 = vsel %vm443_vm2, %v688_v52, %v690_v47  ;;  %v694_v19 = vsel %vm443_vm2, %v690_v47, %v684_v18  ;;  %v672_v15 = vpop.permute.xlu0 %671 }
 0x2a6   : > { %v676_v49 = vsel %vm422_vm3, %v670_v57, %v672_v15  ;;  %v697_v27 = vmul.f32 %v691_v39, %v450_v59  ;;  %v698_v29 = vmul.f32 %v694_v19, %v451_v31 }
 0x2a7   : > { %v680_v13 = vmul.f32 %v676_v49, %v428_v24 }
 0x2a8   : > { %787 = vmatpush.msrb.mxu2 %v697_v27  ;;  %807 = vmatpush.msrb.mxu3 %v698_v29 }
 0x2a9   : > { %768 = vmatpush.msrb.mxu1 %v680_v13 }
 0x2ab   : > { %769 = vmatpush.msrb.mxu1 %v1814_v12  ;;  %v660_v12 = vsel %vm401_vm4, %v1894_v61, %v656_v62 }
 0x2ac   : > { %v674_v18 = vpop.permute.xlu1 %673  ;;  %v610_v37 = vpop.permute.xlu2 %609 }
 0x2ad   : > { %v675_v42 = vsel %vm422_vm3, %v672_v15, %v674_v18  ;;  %v678_v59 = vsel %vm422_vm3, %v674_v18, %v1884_v43  ;;  %v658_v57 = vpop.permute.xlu0 %657  ;;  %v665_v43 = vmul.f32 %v660_v12, %v408_v10 }
 0x2ae   : > { %v681_v31 = vmul.f32 %v675_v42, %v429_v2  ;;  %v682_v24 = vmul.f32 %v678_v59, %v430_v35  ;;  %v659_v63 = vsel %vm401_vm4, %v656_v62, %v658_v57 }
 0x2af   : > { %v666_v2 = vmul.f32 %v659_v63, %v409_v51 }
 0x2b0   : > { %788 = vmatpush.msrb.mxu2 %v681_v31  ;;  %808 = vmatpush.msrb.mxu3 %v682_v24 }
 0x2b2   : > { %789 = vmatpush.msrb.mxu2 %v1836_v36  ;;  %809 = vmatpush.msrb.mxu3 %v1834_v32 }
 0x2b4   : > { %v642_v35 = vpop.permute.xlu1 %641  ;;  %790 = vmatpush.msrb.mxu2 %v665_v43  ;;  %810 = vmatpush.msrb.mxu3 %v666_v2  ;;  %v620_v34 = vpop.permute.xlu2 %619 }
 0x2b5   : > { %v640_v0 = vpop.permute.xlu0 %639  ;;  %v629_v39 = vsel %vm359_vm5, %v620_v34, %v1898_v30  ;;  %v630_v33 = vsel %vm359_vm5, %v626_v28, %v620_v34 }
 0x2b6   : > { %v643_v40 = vsel %vm380_vm6, %v640_v0, %v642_v35  ;;  %v644_v36 = vsel %vm380_vm6, %v1896_v6, %v640_v0  ;;  %v632_v49 = vmul.f32 %v629_v39, %v365_v3 }
 0x2b7   : > { %v649_v10 = vmul.f32 %v644_v36, %v387_v56  ;;  %v650_v51 = vmul.f32 %v643_v40, %v388_v58 }
 0x2b9   : > { %791 = vmatpush.msrb.mxu2 %v649_v10  ;;  %811 = vmatpush.msrb.mxu3 %v650_v51 }
 0x2bc   : > { %v624_v32 = vpop.permute.xlu1 %623 }
 0x2bd   : > { %v627_v53 = vsel %vm359_vm5, %v624_v32, %v626_v28  ;;  %v628_v44 = vsel %vm359_vm5, %v1898_v30, %v624_v32  ;;  %v652_v54 = vpop.permute.xlu0 %651 }
 0x2be   : > { %v661_v56 = vsel %vm401_vm4, %v652_v54, %v1894_v61  ;;  %v662_v58 = vsel %vm401_vm4, %v658_v57, %v652_v54  ;;  %v633_v1 = vmul.f32 %v628_v44, %v366_v26  ;;  %v634_v55 = vmul.f32 %v627_v53, %v367_v9 }
 0x2bf   : > { %v663_v48 = vmul.f32 %v662_v58, %v406_v50  ;;  %v664_v52 = vmul.f32 %v661_v56, %v407_v38  ;;  %v602_v38 = vld [vmem:[#allocation10] sm:$0xff] }
 0x2c0   : > { %792 = vmatpush.msrb.mxu2 %v633_v1  ;;  %812 = vmatpush.msrb.mxu3 %v634_v55 }
 0x2c1   : > { %750 = vmatpush.msrb.mxu0 %v663_v48  ;;  %770 = vmatpush.msrb.mxu1 %v664_v52 }
 0x2c4   : > { %v608_v61 = vpop.permute.xlu1 %607 }
 0x2c5   : > { %v611_v23 = vsel %vm338_vm7, %v608_v61, %v610_v37  ;;  %v612_v26 = vsel %vm338_vm7, %v1902_v25, %v608_v61  ;;  %v604_v20 = vpop.permute.xlu0 %603 }
 0x2c6   : > { %v617_v9 = vmul.f32 %v612_v26, %v345_v41  ;;  %v618_v50 = vmul.f32 %v611_v23, %v346_v8  ;;  %v613_v30 = vsel %vm338_vm7, %v604_v20, %v1902_v25  ;;  %v614_v15 = vsel %vm338_vm7, %v610_v37, %v604_v20 }
 0x2c7   : > { %v2096_v25 = vperm.slane %v1638_v46, 0 }
 0x2c8   : > { %793 = vmatpush.msrb.mxu2 %v617_v9  ;;  %813 = vmatpush.msrb.mxu3 %v618_v50 }
 0x2c9   : > { %974 = vmatmul.msk.f32.vlgmr.msrb.gmra.mxu2 %vm502_vm8, %v602_v38  ;;  %975 = vmatmul.msk.f32.vlgmr.msrb.gmra.mxu3 %vm502_vm8, %v602_v38  ;;  %v616_v27 = vmul.f32 %v613_v30, %v2096_v25 }
 0x2cc   : > { %v636_v47 = vpop.permute.xlu1 %635 }
 0x2cd   : > { %v645_v22 = vsel %vm380_vm6, %v636_v47, %v1896_v6  ;;  %v646_v8 = vsel %vm380_vm6, %v642_v35, %v636_v47  ;;  %v631_v6 = vmul.f32 %v630_v33, %v364_v17 }
 0x2ce   : > { %v647_v41 = vmul.f32 %v646_v8, %v385_v60  ;;  %v648_v19 = vmul.f32 %v645_v22, %v386_v16  ;;  %v2095_v60 = vperm.slane %v1636_v45, 0 }
 0x2d0   : > { %751 = vmatpush.msrb.mxu0 %v647_v41  ;;  %771 = vmatpush.msrb.mxu1 %v648_v19  ;;  %v615_v16 = vmul.f32 %v614_v15, %v2095_v60 }
 0x2d2   : > { %752 = vmatpush.msrb.mxu0 %v631_v6  ;;  %772 = vmatpush.msrb.mxu1 %v632_v49 }
 0x2d4   : > { %753 = vmatpush.msrb.mxu0 %v615_v16  ;;  %773 = vmatpush.msrb.mxu1 %v616_v27 }
 0x2d5   : > { %972 = vmatmul.msk.f32.vlgmr.msrb.gmra.mxu0 %vm502_vm8, %v602_v38  ;;  %973 = vmatmul.msk.f32.vlgmr.msrb.gmra.mxu1 %vm502_vm8, %v602_v38 }
 0x30c   : > { %v733_v21 = vpop.permute.xlu1 %732 }
 0x34c   : > { %v795_v17 = vpop.f32.mrf.mxu2  ;;  %v815_v29 = vpop.f32.mrf.mxu3 }
 0x34d   : > { %v796_v13 = vadd.f32 %v795_v17, %v733_v21  ;;  %v816_v3 = vadd.f32 %v815_v29, %v733_v21 }
 0x34f   : > { %v820_v62 = vadd.f32 %v796_v13, %v1523_v11  ;;  %v821_v45 = vadd.f32 %v816_v3, %v1508_v5 }
 0x351   : > { %824 = vst [vmem:[%s300_s16 + $0x10] sm:$0xff] %v820_v62 }
 0x352   : > { %v755_v46 = vpop.f32.mrf.mxu0  ;;  %v775_v18 = vpop.f32.mrf.mxu1  ;;  %825 = vst [vmem:[%s300_s16 + $0x18] sm:$0xff] %v821_v45 }
 0x353   : > { %v756_v42 = vadd.f32 %v755_v46, %v733_v21  ;;  %v776_v59 = vadd.f32 %v775_v18, %v733_v21 }
 0x355   : > { %v818_v11 = vadd.f32 %v756_v42, %v1505_v4  ;;  %v819_v5 = vadd.f32 %v776_v59, %v1533_v14 }
 0x357   : > { %822 = vst [vmem:[%s300_s16] sm:$0xff] %v818_v11 }
 0x358   : > { %823 = vst [vmem:[%s300_s16 + $0x8] sm:$0xff] %v819_v5 }
 0x359   : > { %1266 = shalt.err (!%p1263_p9)
}
 0x35a   : > { %1001 = dma.vmem_to_hbm [thread:$0]  (%p1449_p5), %s841_s28, 512, %s843_s25, %s827_s26  }
 0x35b PF: > { %s854_s8 = sand.u32 1, %s1301_s18   ;;  %p2097_p10 = scmp.ge.s32.totalorder %s1313_s21, 2 }
 0x35c   : > { %s855_s11 = scalar_lea.sflag [#allocation4], %s854_s8 }
 0x35d   : > { %p1021_p13 = pnand %p2097_p10, %p1453_p6 }
 0x35f   : > { %p1022_p11 = pneg %p1021_p13 }
 0x361   : > { %1296 = dma.done.wait (%p1022_p11), %s855_s11, 512  }
 0x362   : > { %1298 = vsyncadd (%p1022_p11), %s855_s11, 4294966784  ;;  %p20_p0 = scmp.ge.s32.totalorder %s1423_s27, 4   ;;  %s2098_s18 = smov %s1305_s19 }
 0x363   : > { %s2099_s19 = smov %s1309_s20  ;;  %s2100_s20 = smov %s1434_s30 }
 0x364   : > { %s2101_s21 = smov %s1423_s27  ;;  %22 = sbr.rel (!%p20_p0) target bundleno = 7 (0x7), region = 101 }
 0x369   :  { %861 = vsyncpa [#allocation3], 1 }
 0x36a   :  { %863 = vsyncpa [#allocation3 + $0x1], 1 }
 0x36b   :  { %864 = vsyncpa [#allocation6], 1 }
 0x36c   :  { %865 = vsyncpa [#allocation9], 1 }
 0x36d   :  { %866 = vsyncpa [#allocation4], 1 }
 0x36e   :  { %868 = vsyncpa [#allocation4 + $0x1], 1 }

</bundles_post_ra>
